<compile_context>
chip_gen: v5e
topology: v5e:2x2
jax: 0.10.0
libtpu: 0.0.40
codegen_flags: <defaults>
</compile_context>

<pallas_src>
import functools

import jax
import jax.numpy as jnp
from jax import lax
from jax.experimental import pallas as pl
from jax.experimental.pallas import tpu as pltpu

# nn.MaxPool2d(kernel_size=3, stride=2) -- the configuration used in EfficientDet.
KH, KW = 3, 3
SH, SW = 2, 2

_TEMP_FACTOR = 2.0  # kernel-body temporaries, as a multiple of (input + output) block


# ---------------------------------------------------------------------------
# Kernel
# ---------------------------------------------------------------------------
def _hpool(x, c, p):
    """Horizontal 3-tap / stride-2 max with the right zero-pad folded in.

    x: (1, R, G, p*c) where lane group i (lanes [i*c, (i+1)*c)) holds input column
    g*p + i of packed group g.  Returns (1, R, G, (p//2)*c): output column
    g*(p//2) + j lives in lane group j, out[j] = max(col 2j, col 2j+1, col 2j+2);
    input column `w` (the right zero-pad) appears as the zero fill of the shifted group.
    """
    g = x.shape[2]
    cols = [x[:, :, :, i * c:(i + 1) * c] for i in range(p)]
    x0 = cols[0]
    # First sub-column of the NEXT group (input column g*p + p); zero past the last
    # group == the right zero-pad column.
    # TODO(synk): pltpu.roll(x0, shift=-1, axis=2) + a hoisted last-group mask would avoid
    # this sublane-shifted copy if the kernel ever becomes vst-bound (v5e, tiny H*W tiles).
    if g > 1:
        zero_grp = jnp.zeros(x0.shape[:2] + (1, c), x0.dtype)
        nxt = jnp.concatenate([x0[:, :, 1:, :], zero_grp], axis=2)
    else:
        nxt = jnp.zeros_like(x0)
    cols.append(nxt)
    outs = [jnp.maximum(jnp.maximum(cols[2 * j], cols[2 * j + 1]), cols[2 * j + 2])
            for j in range(p // 2)]
    return outs[0] if len(outs) == 1 else jnp.concatenate(outs, axis=-1)


def _maxpool_kernel(x_ref, halo_ref, o_ref, *, t_h, c, p, h_out):
    # x_ref:    (1, 2*t_h, G, p*c)        input rows [2*t_h*t, 2*t_h*(t+1))
    # halo_ref: (1, 1,     G, p*c)        input row   2*t_h*(t+1)   (clamped in-bounds)
    # o_ref:    (1, t_h,   G, (p//2)*c)   output rows [t_h*t, t_h*(t+1))
    t = pl.program_id(1)

    hm = _hpool(x_ref[...], c, p)            # (1, 2*t_h, G, oc)
    hm_halo = _hpool(halo_ref[...], c, p)    # (1, 1,     G, oc)

    g, oc = hm.shape[2], hm.shape[3]
    hm_pairs = hm.reshape(1, t_h, 2, g, oc)  # outer-dim split only (free)
    v0 = hm_pairs[:, :, 0]                   # local input rows 2j
    v1 = hm_pairs[:, :, 1]                   # local input rows 2j+1
    vmax = jnp.maximum(v0, v1)

    # Output row j (local) takes its third vertical tap from input row 2j+2.  That row is
    # real only while the GLOBAL output row is < h_out - 1; at/after that the tap is the
    # bottom zero-pad row (and, on a partial last tile, whatever garbage the padded block
    # DMA brought in must not leak into valid rows).
    limit3 = h_out - 1 - t_h * t             # number of valid third-taps in this tile

    # Last row of the tile: its third tap is the halo row (or the zero-pad row).
    halo_tap = jnp.where(t_h - 1 < limit3, hm_halo, jnp.zeros_like(hm_halo))
    o_ref[:, pl.ds(t_h - 1, 1)] = jnp.maximum(vmax[:, t_h - 1:], halo_tap)

    if t_h > 1:
        third = v0[:, 1:]                                           # local rows 2j+2
        row = lax.broadcasted_iota(jnp.int32, (1, t_h - 1, 1, 1), 1)
        third = jnp.where(row < limit3, third, 0)
        o_ref[:, pl.ds(0, t_h - 1)] = jnp.maximum(vmax[:, :t_h - 1], third)


# ---------------------------------------------------------------------------
# Tiling / VMEM budgeting
# ---------------------------------------------------------------------------
def _vmem_capacity_bytes():
    try:
        cap = getattr(pltpu.get_tpu_info(), "vmem_capacity_bytes", None)
        if cap:
            return int(cap)
    except Exception:
        pass
    return 64 * 1024 * 1024  # conservative default (v7x per-TensorCore VMEM)


def _padded_tile_bytes(sub, lanes, itemsize):
    # Dtype-aware (sublane, lane) tile padding: (8,128) f32, (16,128) bf16, (32,128) int8.
    sub_tile = max(1, 32 // itemsize)
    return (-(-sub // sub_tile) * sub_tile) * (-(-lanes // 128) * 128) * itemsize


def _step_vmem_bytes(t_h, g, in_lanes, out_lanes, itemsize):
    p_in = _padded_tile_bytes(g, in_lanes, itemsize)
    p_out = _padded_tile_bytes(g, out_lanes, itemsize)
    blocks = 2 * t_h * p_in + p_in + t_h * p_out           # main + halo + out (1 buffer each)
    temps = _TEMP_FACTOR * (2 * t_h * p_in + t_h * p_out)  # kernel-body temporaries
    return int(2 * blocks + temps)                          # Pallas double-buffers the blocks


def _pick_t_h(h_out, g, in_lanes, out_lanes, itemsize, budget):
    base = _step_vmem_bytes(0, g, in_lanes, out_lanes, itemsize)
    per_row = _step_vmem_bytes(1, g, in_lanes, out_lanes, itemsize) - base
    return max(1, min(h_out, (budget - base) // max(1, per_row)))


def _pick_pack(w, c):
    # Pack p adjacent W columns into lanes so the OUTPUT lane dim (p//2)*c reaches >=128
    # (unmasked vst + long output DMA runs), as long as p divides W.
    p = 2
    while (p // 2) * c < 128 and p < 8 and w % (2 * p) == 0:
        p *= 2
    return p


# ---------------------------------------------------------------------------
# Entry points
# ---------------------------------------------------------------------------
def maxpool2d_static_same_padding_nhwc(x_nhwc, *, vmem_budget_bytes=None, row_tile=None):
    """MaxPool2dStaticSamePadding(3, 2) on an NHWC tensor (fast path: zero transposes)."""
    n, h, w, c = x_nhwc.shape
    if h % 2 or w % 2:
        # TODO(synk): the hard-coded [0,1,0,1] pad matches the EfficientDet usage with even
        # feature maps; odd H/W would need different output-size plumbing.
        raise ValueError(f"expected even H and W, got H={h}, W={w}")
    h_out, w_out = h // 2, w // 2
    itemsize = jnp.dtype(x_nhwc.dtype).itemsize

    p = _pick_pack(w, c)
    g = w // p                         # packed W groups (sublane dim)
    in_lanes, out_lanes = p * c, (p // 2) * c

    vmem_cap = _vmem_capacity_bytes()
    if vmem_budget_bytes is None:
        # Double-buffered blocks + temporaries: ~28 MiB on v5e/v6e (128 MiB VMEM),
        # ~16 MiB on v7x (64 MiB VMEM per TensorCore).
        vmem_budget_bytes = min(vmem_cap // 4, 28 * 1024 * 1024)

    if row_tile is not None:
        t_h = max(1, min(h_out, int(row_tile)))
    else:
        t_h = _pick_t_h(h_out, g, in_lanes, out_lanes, itemsize, vmem_budget_bytes)
        if n == 1 and h_out >= 2 and t_h >= h_out:
            # Keep >=2 parallel grid steps so both v7x TensorCores get work.
            t_h = pl.cdiv(h_out, 2)
    n_h = pl.cdiv(h_out, t_h)
    t_h = pl.cdiv(h_out, n_h)          # balance tile sizes across the grid
    n_h = pl.cdiv(h_out, t_h)

    need = _step_vmem_bytes(t_h, g, in_lanes, out_lanes, itemsize)
    vmem_limit = int(min(vmem_cap * 3 // 4, max(32 * 1024 * 1024, need * 5 // 4)))

    # FREE reshape: pack p adjacent W columns into the lane dim (contiguous minor dims).
    xp = x_nhwc.reshape(n, h, g, in_lanes)

    kernel = functools.partial(_maxpool_kernel, t_h=t_h, c=c, p=p, h_out=h_out)
    bytes_accessed = (n * h * w * c + n * h_out * w_out * c) * itemsize
    two_th = 2 * t_h

    out_packed = pl.pallas_call(
        kernel,
        out_shape=jax.ShapeDtypeStruct((n, h_out, g, out_lanes), x_nhwc.dtype),
        grid=(n, n_h),
        in_specs=[
            # main block: the 2*t_h input rows feeding this output-row tile
            pl.BlockSpec((1, two_th, g, in_lanes), lambda b, t: (b, t, 0, 0)),
            # 1-row halo: first input row of the next tile (clamped in-bounds; the kernel
            # replaces it by the bottom zero-pad row when it falls past the image).
            # TODO(synk): sweep pipeline_mode=pl.Buffered(3) here on v7x once block sizes
            # are settled (tiny DMA whose fixed latency is relatively larger at 3.2 TB/s).
            pl.BlockSpec((1, 1, g, in_lanes),
                         lambda b, t: (b, jnp.minimum((t + 1) * two_th, h - 1), 0, 0)),
        ],
        out_specs=pl.BlockSpec((1, t_h, g, out_lanes), lambda b, t: (b, t, 0, 0)),
        compiler_params=pltpu.CompilerParams(
            dimension_semantics=("parallel", "parallel"),
            vmem_limit_bytes=vmem_limit),
        cost_estimate=pl.CostEstimate(
            flops=6 * n * h_out * w_out * c,
            transcendentals=0,
            bytes_accessed=bytes_accessed),
    )(xp, xp)

    # FREE reshape: unpack the paired output columns back to NHWC.
    return out_packed.reshape(n, h_out, w_out, c)


def maxpool2d_static_same_padding(x_nchw, **kwargs):
    """Drop-in equivalent of the PyTorch module (NCHW in / NCHW out).

    NOTE: maxpool is HBM-bandwidth-bound and the two layout transposes below cost more HBM
    traffic than the pool itself; prefer keeping activations NHWC end-to-end and calling
    `maxpool2d_static_same_padding_nhwc` directly.
    TODO(synk): if the surrounding mmseg/EfficientDet model is converted to NHWC, delete
    this shim (or fold an in-kernel NCHW->NHWC relayout under the kernel's DMA slack).
    """
    x_nhwc = jnp.transpose(x_nchw, (0, 2, 3, 1))
    y = maxpool2d_static_same_padding_nhwc(x_nhwc, **kwargs)
    return jnp.transpose(y, (0, 3, 1, 2))


# ---------------------------------------------------------------------------
# Reference + self-test
# ---------------------------------------------------------------------------
def _reference_nchw(x_nchw):
    # Pure-JAX reference: explicit zero pad (as in F.pad([0,1,0,1])) then VALID max pool.
    xp = jnp.pad(x_nchw, ((0, 0), (0, 0), (0, 1), (0, 1)), constant_values=0.0)
    return lax.reduce_window(xp, -jnp.inf, lax.max,
                             (1, 1, KH, KW), (1, 1, SH, SW), "VALID")


if __name__ == "__main__":
    key = jax.random.PRNGKey(0)
    k1, k2 = jax.random.split(key)

    # 1) NCHW drop-in path (matches the PyTorch module's layout contract).
    x = jax.random.normal(k1, (2, 4, 16, 16), dtype=jnp.float32)
    out = jax.block_until_ready(maxpool2d_static_same_padding(x))
    ref = _reference_nchw(x)
    assert out.shape == (2, 4, 8, 8), out.shape
    assert out.dtype == x.dtype, out.dtype
    assert jnp.allclose(out, ref), "NCHW path mismatch vs reference max pool"

    # 2) NHWC fast path, with a forced small row-tile so the halo / partial-last-tile /
    #    non-divisible-H_out code paths are exercised.
    x2 = jax.random.normal(k2, (1, 26, 20, 3), dtype=jnp.float32)
    out2 = jax.block_until_ready(maxpool2d_static_same_padding_nhwc(x2, row_tile=4))
    ref2 = jnp.transpose(_reference_nchw(jnp.transpose(x2, (0, 3, 1, 2))), (0, 2, 3, 1))
    assert out2.shape == (1, 13, 10, 3), out2.shape
    assert jnp.allclose(out2, ref2), "NHWC path mismatch vs reference max pool"

    print("KERNEL_OK")
</pallas_src>

<mosaic_0001>
module attributes {stable_mosaic.version = 11 : i64} {
  func.func @_maxpool_kernel(%arg0: i32, %arg1: i32, %arg2: memref<1x16x2x32xf32, #tpu.memory_space<vmem>>, %arg3: memref<1x1x2x32xf32, #tpu.memory_space<vmem>>, %arg4: memref<1x8x2x16xf32, #tpu.memory_space<vmem>>) attributes {dimension_semantics = [#tpu.dimension_semantics<parallel>, #tpu.dimension_semantics<parallel>], iteration_bounds = array<i64: 2, 1>, scalar_prefetch = 0 : i64, scratch_operands = 0 : i64, tpu.core_type = #tpu.core_type<tc>, window_params = [{transform_indices = @transform_0, window_bounds = array<i64: 1, 16, 2, 32>}, {transform_indices = @transform_1, window_bounds = array<i64: 1, 1, 2, 32>}, {transform_indices = @transform_2, window_bounds = array<i64: 1, 8, 2, 16>}]} {
    %c0 = arith.constant 0 : index
    %c0_0 = arith.constant 0 : index
    %c0_1 = arith.constant 0 : index
    %c0_2 = arith.constant 0 : index
    %0 = vector.load %arg2[%c0, %c0_0, %c0_1, %c0_2] : memref<1x16x2x32xf32, #tpu.memory_space<vmem>>, vector<1x16x2x32xf32>
    %1 = vector.extract_strided_slice %0 {offsets = [0, 0, 0, 0], sizes = [1, 16, 2, 4], strides = [1, 1, 1, 1]} : vector<1x16x2x32xf32> to vector<1x16x2x4xf32>
    %2 = vector.extract_strided_slice %0 {offsets = [0, 0, 0, 4], sizes = [1, 16, 2, 4], strides = [1, 1, 1, 1]} : vector<1x16x2x32xf32> to vector<1x16x2x4xf32>
    %3 = vector.extract_strided_slice %0 {offsets = [0, 0, 0, 8], sizes = [1, 16, 2, 4], strides = [1, 1, 1, 1]} : vector<1x16x2x32xf32> to vector<1x16x2x4xf32>
    %4 = vector.extract_strided_slice %0 {offsets = [0, 0, 0, 12], sizes = [1, 16, 2, 4], strides = [1, 1, 1, 1]} : vector<1x16x2x32xf32> to vector<1x16x2x4xf32>
    %5 = vector.extract_strided_slice %0 {offsets = [0, 0, 0, 16], sizes = [1, 16, 2, 4], strides = [1, 1, 1, 1]} : vector<1x16x2x32xf32> to vector<1x16x2x4xf32>
    %6 = vector.extract_strided_slice %0 {offsets = [0, 0, 0, 20], sizes = [1, 16, 2, 4], strides = [1, 1, 1, 1]} : vector<1x16x2x32xf32> to vector<1x16x2x4xf32>
    %7 = vector.extract_strided_slice %0 {offsets = [0, 0, 0, 24], sizes = [1, 16, 2, 4], strides = [1, 1, 1, 1]} : vector<1x16x2x32xf32> to vector<1x16x2x4xf32>
    %8 = vector.extract_strided_slice %0 {offsets = [0, 0, 0, 28], sizes = [1, 16, 2, 4], strides = [1, 1, 1, 1]} : vector<1x16x2x32xf32> to vector<1x16x2x4xf32>
    %cst = arith.constant 0.000000e+00 : f32
    %9 = vector.broadcast %cst : f32 to vector<1x16x1x4xf32>
    %10 = vector.extract_strided_slice %1 {offsets = [0, 0, 1, 0], sizes = [1, 16, 1, 4], strides = [1, 1, 1, 1]} : vector<1x16x2x4xf32> to vector<1x16x1x4xf32>
    %11 = tpu.concatenate %10, %9 in 2 : vector<1x16x1x4xf32>, vector<1x16x1x4xf32> -> vector<1x16x2x4xf32>
    %12 = arith.maximumf %1, %2 : vector<1x16x2x4xf32>
    %13 = arith.maximumf %12, %3 : vector<1x16x2x4xf32>
    %14 = arith.maximumf %3, %4 : vector<1x16x2x4xf32>
    %15 = arith.maximumf %14, %5 : vector<1x16x2x4xf32>
    %16 = arith.maximumf %5, %6 : vector<1x16x2x4xf32>
    %17 = arith.maximumf %16, %7 : vector<1x16x2x4xf32>
    %18 = arith.maximumf %7, %8 : vector<1x16x2x4xf32>
    %19 = arith.maximumf %18, %11 : vector<1x16x2x4xf32>
    %20 = tpu.concatenate %13, %15, %17, %19 in 3 : vector<1x16x2x4xf32>, vector<1x16x2x4xf32>, vector<1x16x2x4xf32>, vector<1x16x2x4xf32> -> vector<1x16x2x16xf32>
    %c0_3 = arith.constant 0 : index
    %c0_4 = arith.constant 0 : index
    %c0_5 = arith.constant 0 : index
    %c0_6 = arith.constant 0 : index
    %21 = vector.load %arg3[%c0_3, %c0_4, %c0_5, %c0_6] : memref<1x1x2x32xf32, #tpu.memory_space<vmem>>, vector<1x1x2x32xf32>
    %22 = vector.extract_strided_slice %21 {offsets = [0, 0, 0, 0], sizes = [1, 1, 2, 4], strides = [1, 1, 1, 1]} : vector<1x1x2x32xf32> to vector<1x1x2x4xf32>
    %23 = vector.extract_strided_slice %21 {offsets = [0, 0, 0, 4], sizes = [1, 1, 2, 4], strides = [1, 1, 1, 1]} : vector<1x1x2x32xf32> to vector<1x1x2x4xf32>
    %24 = vector.extract_strided_slice %21 {offsets = [0, 0, 0, 8], sizes = [1, 1, 2, 4], strides = [1, 1, 1, 1]} : vector<1x1x2x32xf32> to vector<1x1x2x4xf32>
    %25 = vector.extract_strided_slice %21 {offsets = [0, 0, 0, 12], sizes = [1, 1, 2, 4], strides = [1, 1, 1, 1]} : vector<1x1x2x32xf32> to vector<1x1x2x4xf32>
    %26 = vector.extract_strided_slice %21 {offsets = [0, 0, 0, 16], sizes = [1, 1, 2, 4], strides = [1, 1, 1, 1]} : vector<1x1x2x32xf32> to vector<1x1x2x4xf32>
    %27 = vector.extract_strided_slice %21 {offsets = [0, 0, 0, 20], sizes = [1, 1, 2, 4], strides = [1, 1, 1, 1]} : vector<1x1x2x32xf32> to vector<1x1x2x4xf32>
    %28 = vector.extract_strided_slice %21 {offsets = [0, 0, 0, 24], sizes = [1, 1, 2, 4], strides = [1, 1, 1, 1]} : vector<1x1x2x32xf32> to vector<1x1x2x4xf32>
    %29 = vector.extract_strided_slice %21 {offsets = [0, 0, 0, 28], sizes = [1, 1, 2, 4], strides = [1, 1, 1, 1]} : vector<1x1x2x32xf32> to vector<1x1x2x4xf32>
    %cst_7 = arith.constant 0.000000e+00 : f32
    %30 = vector.broadcast %cst_7 : f32 to vector<1x1x1x4xf32>
    %31 = vector.extract_strided_slice %22 {offsets = [0, 0, 1, 0], sizes = [1, 1, 1, 4], strides = [1, 1, 1, 1]} : vector<1x1x2x4xf32> to vector<1x1x1x4xf32>
    %32 = tpu.concatenate %31, %30 in 2 : vector<1x1x1x4xf32>, vector<1x1x1x4xf32> -> vector<1x1x2x4xf32>
    %33 = arith.maximumf %22, %23 : vector<1x1x2x4xf32>
    %34 = arith.maximumf %33, %24 : vector<1x1x2x4xf32>
    %35 = arith.maximumf %24, %25 : vector<1x1x2x4xf32>
    %36 = arith.maximumf %35, %26 : vector<1x1x2x4xf32>
    %37 = arith.maximumf %26, %27 : vector<1x1x2x4xf32>
    %38 = arith.maximumf %37, %28 : vector<1x1x2x4xf32>
    %39 = arith.maximumf %28, %29 : vector<1x1x2x4xf32>
    %40 = arith.maximumf %39, %32 : vector<1x1x2x4xf32>
    %41 = tpu.concatenate %34, %36, %38, %40 in 3 : vector<1x1x2x4xf32>, vector<1x1x2x4xf32>, vector<1x1x2x4xf32>, vector<1x1x2x4xf32> -> vector<1x1x2x16xf32>
    %42 = vector.shape_cast %20 : vector<1x16x2x16xf32> to vector<1x8x2x2x16xf32>
    %43 = vector.extract_strided_slice %42 {offsets = [0, 0, 0, 0, 0], sizes = [1, 8, 1, 2, 16], strides = [1, 1, 1, 1, 1]} : vector<1x8x2x2x16xf32> to vector<1x8x1x2x16xf32>
    %44 = vector.shape_cast %43 : vector<1x8x1x2x16xf32> to vector<1x8x2x16xf32>
    %45 = vector.extract_strided_slice %42 {offsets = [0, 0, 1, 0, 0], sizes = [1, 8, 1, 2, 16], strides = [1, 1, 1, 1, 1]} : vector<1x8x2x2x16xf32> to vector<1x8x1x2x16xf32>
    %46 = vector.shape_cast %45 : vector<1x8x1x2x16xf32> to vector<1x8x2x16xf32>
    %47 = arith.maximumf %44, %46 : vector<1x8x2x16xf32>
    %c8_i32 = arith.constant 8 : i32
    %48 = arith.muli %c8_i32, %arg1 : i32
    %c7_i32 = arith.constant 7 : i32
    %49 = arith.subi %c7_i32, %48 : i32
    %c7_i32_8 = arith.constant 7 : i32
    %50 = arith.cmpi sgt, %49, %c7_i32_8 : i32
    %cst_9 = arith.constant 0.000000e+00 : f32
    %51 = vector.broadcast %cst_9 : f32 to vector<1x1x2x16xf32>
    %52 = arith.select %50, %41, %51 : vector<1x1x2x16xf32>
    %53 = vector.extract_strided_slice %47 {offsets = [0, 7, 0, 0], sizes = [1, 1, 2, 16], strides = [1, 1, 1, 1]} : vector<1x8x2x16xf32> to vector<1x1x2x16xf32>
    %54 = arith.maximumf %53, %52 : vector<1x1x2x16xf32>
    %c0_10 = arith.constant 0 : index
    %c7 = arith.constant 7 : index
    %c0_11 = arith.constant 0 : index
    %c0_12 = arith.constant 0 : index
    %55 = vector.load %arg4[%c0_10, %c7, %c0_11, %c0_12] : memref<1x8x2x16xf32, #tpu.memory_space<vmem>>, vector<1x1x2x16xf32>
    tpu.vector_store %arg4[%c0_10, %c7, %c0_11, %c0_12], %54 {strides = array<i32>} : memref<1x8x2x16xf32, #tpu.memory_space<vmem>>, vector<1x1x2x16xf32>,
    %56 = vector.extract_strided_slice %44 {offsets = [0, 1, 0, 0], sizes = [1, 7, 2, 16], strides = [1, 1, 1, 1]} : vector<1x8x2x16xf32> to vector<1x7x2x16xf32>
    %57 = tpu.iota {dimensions = array<i32: 1>} : vector<1x7x1x1xi32>
    %58 = vector.broadcast %49 : i32 to vector<1x7x1x1xi32>
    %59 = arith.cmpi slt, %57, %58 : vector<1x7x1x1xi32>
    %c0_i32 = arith.constant 0 : i32
    %60 = arith.sitofp %c0_i32 : i32 to f32
    %61 = vector.shape_cast %59 : vector<1x7x1x1xi1> to vector<1x7x1x1xi1>
    %62 = vector.broadcast %61 : vector<1x7x1x1xi1> to vector<1x7x2x16xi1>
    %63 = vector.broadcast %60 : f32 to vector<1x7x2x16xf32>
    %64 = arith.select %62, %56, %63 : vector<1x7x2x16xi1>, vector<1x7x2x16xf32>
    %65 = vector.extract_strided_slice %47 {offsets = [0, 0, 0, 0], sizes = [1, 7, 2, 16], strides = [1, 1, 1, 1]} : vector<1x8x2x16xf32> to vector<1x7x2x16xf32>
    %66 = arith.maximumf %65, %64 : vector<1x7x2x16xf32>
    %c0_13 = arith.constant 0 : index
    %c0_14 = arith.constant 0 : index
    %c0_15 = arith.constant 0 : index
    %c0_16 = arith.constant 0 : index
    %67 = vector.load %arg4[%c0_13, %c0_14, %c0_15, %c0_16] : memref<1x8x2x16xf32, #tpu.memory_space<vmem>>, vector<1x7x2x16xf32>
    tpu.vector_store %arg4[%c0_13, %c0_14, %c0_15, %c0_16], %66 {strides = array<i32>} : memref<1x8x2x16xf32, #tpu.memory_space<vmem>>, vector<1x7x2x16xf32>,
    return
  }
  func.func @transform_0(%arg0: i32, %arg1: i32) -> (i32, i32, i32, i32) {
    %c0_i32 = arith.constant 0 : i32
    %c0_i32_0 = arith.constant 0 : i32
    %c0_i32_1 = arith.constant 0 : i32
    return %arg0, %arg1, %c0_i32, %c0_i32_0 : i32, i32, i32, i32
  }
  func.func @transform_1(%arg0: i32, %arg1: i32) -> (i32, i32, i32, i32) {
    %c1_i32 = arith.constant 1 : i32
    %0 = arith.addi %arg1, %c1_i32 : i32
    %c16_i32 = arith.constant 16 : i32
    %1 = arith.muli %0, %c16_i32 : i32
    %c15_i32 = arith.constant 15 : i32
    %2 = arith.minsi %1, %c15_i32 : i32
    %c0_i32 = arith.constant 0 : i32
    %c0_i32_0 = arith.constant 0 : i32
    %c0_i32_1 = arith.constant 0 : i32
    return %arg0, %2, %c0_i32, %c0_i32_0 : i32, i32, i32, i32
  }
  func.func @transform_2(%arg0: i32, %arg1: i32) -> (i32, i32, i32, i32) {
    %c0_i32 = arith.constant 0 : i32
    %c0_i32_0 = arith.constant 0 : i32
    %c0_i32_1 = arith.constant 0 : i32
    return %arg0, %arg1, %c0_i32, %c0_i32_0 : i32, i32, i32, i32
  }
}

</mosaic_0001>

<bundles_post_ra>
// kernel: tpu_custom_call.1
= control target key start
LH: loop header
LB: loop body
LE: loop exit
PB: predicated region body
PF: predicated region fallthrough
CT: control target
= control target key end

     0   :  { %7 = vsyncpa [#allocation3], 0  ;;  %s1874_s0 = inlined_call_operand.hbm [shape: f32[2,16,2,32], index: 0, kind: input, shape index: {}]   ;;  %s1875_s1 = inlined_call_operand.hbm [shape: f32[2,16,2,32], index: 1, kind: input, shape index: {}]   ;;  %s1876_s2 = inlined_call_operand.hbm [shape: f32[2,8,2,16], index: 2, kind: output, shape index: {}]  }
   0x1   :  { %9 = vsyncpa [#allocation3 + $0x1], 0 }
   0x2   :  { %10 = vsyncpa [#allocation6], 0 }
   0x3   :  { %12 = vsyncpa [#allocation6 + $0x1], 0 }
   0x4   :  { %13 = vsyncpa [#allocation4], 0 }
   0x5   :  { %15 = vsyncpa [#allocation4 + $0x1], 0  ;;  %s1254_s9 = smov 0   ;;  %s1256_s10 = smov 0  }
   0x6   :  { %s1258_s11 = smov 0   ;;  %s1260_s12 = smov 0  }
   0x7   :  { %s1262_s13 = smov 0   ;;  %s1264_s14 = smov 0  }
   0x8 LB: > { %s983_s15 = sadd.s32 4294967295, %s1229_s14   ;;  %s984_s16 = sadd.s32 4294967294, %s1229_s14   ;;  %s1229_s14 = sphi %s1264_s14, %s21_s14   ;;  %s1225_s13 = sphi %s1262_s13, %s1886_s13   ;;  %s1221_s12 = sphi %s1260_s12, %s1885_s12   ;;  %s1217_s11 = sphi %s1258_s11, %s1884_s11   ;;  %s1213_s10 = sphi %s1256_s10, %s1883_s10   ;;  %s1209_s9 = sphi %s1254_s9, %s1882_s9  }
   0x9   : > { %s33_s17 = sadd.s32 1, %s1225_s13  ;;  %s42_s18 = sadd.s32 1, %s1217_s11 }
   0xa   : > { %p35_p0 = scmp.ge.s32.totalorder %s33_s17, 2  ;;  %p49_p1 = scmp.ne.s32.totalorder %s1217_s11, %s1213_s10 }
   0xb   : > { %p50_p2 = scmp.eq.s32.totalorder %s1229_s14, 0  ;;  %p55_p3 = scmp.ne.s32.totalorder %s1213_s10, %s1209_s9 }
   0xc   : > { %s1888_s17 = smov (%p35_p0, %s33_s17), 0  ;;  %p56_p5 = scmp.eq.s32.totalorder %s983_s15, 0 }
   0xd   : > { %p1295_p4 = por %p50_p2, %p49_p1  ;;  %s37_s20 = ssub.s32 %s1225_s13, %s1888_s17 }
   0xe   : > { %p117_p6 = scmp.eq.s32.totalorder %s983_s15, 1  ;;  %p40_p7 = scmp.eq.s32.totalorder %s37_s20, 0 }
   0xf   : > { %p1301_p8 = por %p56_p5, %p55_p3  ;;  %p123_p10 = scmp.eq.s32.totalorder %s984_s16, 1 }
  0x10   : > { %p1305_p9 = por %p117_p6, %p49_p1  ;;  %p986_p12 = scmp.ge.s32.totalorder %s1229_s14, 2 }
  0x11   : > { %s1310_s23 = scalar_select %p40_p7, %s1217_s11, %s42_s18  }
  0x12   : > { %p1312_p11 = por %p123_p10, %p55_p3  ;;  %p1025_p13 = scmp.lt.s32.totalorder %s1229_s14, 2 }
  0x13   : > { %s143_s25 = sand.u32 1, %s1217_s11   ;;  %s1003_s27 = sshll.u32 %s1225_s13, 5 }
  0x14   : > { %s987_s26 = sshll.u32 %s143_s25, 5  ;;  %s154_s30 = scalar_lea.hbm %s1874_s0, %s1003_s27 }
  0x15   : > { %s147_s3 = scalar_lea.vmem [#allocation2], %s987_s26  ;;  %s155_s5 = sshll.u32 %s154_s30, 4  ;;  %s156_s5 = int_to_ptr.hbm [resolvable:$true] %s155_s5 }
  0x16   : > { %s157_s4 = sshll.u32 %s147_s3, 4  ;;  %p1325_p0 = pnand %p1025_p13, %p1295_p4  ;;  %s158_s4 = int_to_ptr.vmem [resolvable:$true] %s157_s4 }
  0x17   : > { %p993_p1 = scmp.ge.s32.totalorder %s1229_s14, 1  ;;  %s144_s7 = scalar_lea.sflag [#allocation3], %s143_s25 }
  0x18   : > { %s1231_s8 = smov 32   ;;  %s1232_s15 = smov 2  }
  0x19   : > { %1017 = dma.hbm_to_vmem [thread:$0]  (!%p1325_p0), %s156_s5, 512, %s158_s4, %s144_s7, %s1231_s8, %s1231_s8, %s1232_s15  }
  0x1a   : > { %p190_p2 = scmp.lt.s32.totalorder %s1229_s14, 3  ;;  %s990_s16 = sshll.u32 %s143_s25, 1 }
  0x1b   : > { %s1005_s18 = sadd.s32 30, %s1003_s27  ;;  %s171_s28 = scalar_lea.vmem [#allocation5], %s990_s16 }
  0x1c   : > { %p191_p3 = pnand %p993_p1, %p190_p2  ;;  %s181_s19 = scalar_lea.hbm %s1875_s1, %s1005_s18 }
  0x1d   : > { %s185_s29 = sshll.u32 %s171_s28, 4  ;;  %s183_s30 = sshll.u32 %s181_s19, 4  ;;  %s186_s29 = int_to_ptr.vmem [resolvable:$true] %s185_s29  ;;  %s184_s30 = int_to_ptr.hbm [resolvable:$true] %s183_s30 }
  0x1e   : > { %s168_s3 = scalar_lea.sflag [#allocation6], %s143_s25  ;;  %194 = sbr.rel (%p191_p3) target bundleno = 440 (0x1b8), region = 28 }
  0x1f   : > { %1020 = dma.hbm_to_vmem [thread:$0]  (!%p1325_p0), %s184_s30, 32, %s186_s29, %s168_s3  }
  0x20   : > { %s1339_s4 = sand.u32 (!%p191_p3), 1, %s1213_s10  }
  0x21   : > { %s994_s27 = sshll.u32 (!%p191_p3), %s1339_s4, 5  ;;  %s197_s5 = scalar_lea.sflag (!%p191_p3), [#allocation3], %s1339_s4 }
  0x22   : > { %s1343_s7 = scalar_lea.vmem (!%p191_p3), [#allocation2], %s994_s27 }
  0x23   : > { %1196 = dma.done.wait (%p1301_p8), %s197_s5, 512  }
  0x24   : > { %1198 = vsyncadd (%p1301_p8), %s197_s5, 4294966784  ;;  %s207_s25 = scalar_lea.sflag [#allocation6], %s1339_s4 }
  0x25   : > { %1200 = dma.done.wait (%p1301_p8), %s207_s25, 32  }
  0x26   : > { %1202 = vsyncadd (%p1301_p8), %s207_s25, 4294967264  ;;  %v1355_v0 = vld [vmem:[%s1343_s7 + $0x8] sm:$0x3]  ;;  %v1358_v1 = vld [vmem:[%s1343_s7 + $0x4] sm:$0x3]  ;;  %s1233_s6 = smov 124  }
  0x27   : > { %v1361_v2 = vld [vmem:[%s1343_s7] sm:$0x3]  ;;  %332 = vrot.lane.b32.xlu2 %v1355_v0, %s1233_s6  ;;  %328 = vrot.lane.b32.xlu1 %v1358_v1, %s1233_s6  ;;  %v1370_v3 = vld [vmem:[%s1343_s7 + $0xa] sm:$0x3]  ;;  %s1234_s21 = smov 120   ;;  %vm307_vm0 = vcmask 1040384  }
  0x28   : > { %324 = vrot.lane.b32.xlu0 %v1361_v2, %s1233_s6  ;;  %v1373_v4 = vld [vmem:[%s1343_s7 + $0x6] sm:$0x3]  ;;  %v1376_v5 = vld [vmem:[%s1343_s7 + $0x2] sm:$0x3]  ;;  %v1385_v6 = vld [vmem:[%s1343_s7 + $0x10] sm:$0x3] }
  0x29   : > { %v1388_v7 = vld [vmem:[%s1343_s7 + $0xe] sm:$0x3]  ;;  %v1391_v8 = vld [vmem:[%s1343_s7 + $0xc] sm:$0x3]  ;;  %v1400_v9 = vld [vmem:[%s1343_s7 + $0x16] sm:$0x3] }
  0x2a   : > { %v1403_v10 = vld [vmem:[%s1343_s7 + $0x14] sm:$0x3]  ;;  %v1406_v11 = vld [vmem:[%s1343_s7 + $0x12] sm:$0x3]  ;;  %v1415_v12 = vld [vmem:[%s1343_s7 + $0x1c] sm:$0x3] }
  0x2b   : > { %v1418_v13 = vld [vmem:[%s1343_s7 + $0x1a] sm:$0x3]  ;;  %v1421_v14 = vld [vmem:[%s1343_s7 + $0x18] sm:$0x3]  ;;  %v1430_v15 = vld [vmem:[%s1343_s7 + $0x1e] sm:$0x3] }
  0x2c   : > { %v275_v16 = vrot.slane %v1361_v2, 1  ;;  %s1235_s8 = smov 24   ;;  %v277_v18 = vrot.slane %v1358_v1, 1  ;;  %v278_v19 = vrot.slane %v1373_v4, 1  ;;  %v276_v20 = vrot.slane %v1376_v5, 1  ;;  %s1236_s15 = smov 116  }
  0x2d   : > { %v280_v24 = vrot.slane %v1370_v3, 1  ;;  %v281_v25 = vrot.slane %v1391_v8, 1  ;;  %v279_v27 = vrot.slane %v1355_v0, 1  ;;  %v283_v31 = vrot.slane %v1385_v6, 1  ;;  %s996_s16 = sshll.u32 %s1339_s4, 4  ;;  %s1006_s20 = sshll.u32 %s1221_s12, 4 }
  0x2e   : > { %v308_v17 = vsel %vm307_vm0, %v275_v16, 0.0  ;;  %v310_v21 = vsel %vm307_vm0, %v277_v18, 0.0  ;;  %v311_v22 = vsel %vm307_vm0, %v278_v19, 0.0  ;;  %v309_v23 = vsel %vm307_vm0, %v276_v20, 0.0  ;;  %s1760_s18 = scalar_lea.vmem [#allocation7], %s996_s16  ;;  %s867_s28 = scalar_lea.hbm %s1876_s2, %s1006_s20 }
  0x2f   : > { %334 = vrot.lane.b32.xlu2 %v1370_v3, %s1233_s6  ;;  %330 = vrot.lane.b32.xlu1 %v1373_v4, %s1233_s6  ;;  %v313_v28 = vsel %vm307_vm0, %v280_v24, 0.0  ;;  %v314_v29 = vsel %vm307_vm0, %v281_v25, 0.0  ;;  %v312_v30 = vsel %vm307_vm0, %v279_v27, 0.0  ;;  %v284_v32 = vrot.slane %v1406_v11, 1  ;;  %s868_s12 = sshll.u32 %s1760_s18, 4  ;;  %s870_s29 = sshll.u32 %s867_s28, 4  ;;  %s869_s12 = int_to_ptr.vmem [resolvable:$true] %s868_s12  ;;  %s871_s29 = int_to_ptr.hbm [resolvable:$true] %s870_s29 }
  0x30   : > { %326 = vrot.lane.b32.xlu0 %v1376_v5, %s1233_s6  ;;  %v282_v34 = vrot.slane %v1388_v7, 1  ;;  %v316_v35 = vsel %vm307_vm0, %v283_v31, 0.0  ;;  %v286_v38 = vrot.slane %v1400_v9, 1  ;;  %v287_v39 = vrot.slane %v1421_v14, 1  ;;  %s854_s30 = scalar_lea.sflag [#allocation4], %s1339_s4  ;;  %s1157_s3 = sshra.s32 %s871_s29, 4  ;;  %s1158_s3 = int_to_ptr.hbm [resolvable:$true] %s1157_s3 }
  0x31   : > { %v317_v36 = vsel %vm307_vm0, %v284_v32, 0.0  ;;  %v285_v41 = vrot.slane %v1403_v10, 1  ;;  %v289_v45 = vrot.slane %v1415_v12, 1  ;;  %v290_v46 = vrot.slane %v1430_v15, 1  ;;  %s1159_s27 = scalar_lea.hbm %s1158_s3, 16  ;;  %s1163_s25 = scalar_lea.hbm %s1876_s2, 32 }
  0x32   : > { %v315_v37 = vsel %vm307_vm0, %v282_v34, 0.0  ;;  %v319_v42 = vsel %vm307_vm0, %v286_v38, 0.0  ;;  %v320_v43 = vsel %vm307_vm0, %v287_v39, 0.0  ;;  %v288_v49 = vrot.slane %v1418_v13, 1  ;;  %p1160_p4 = scmp.ne.s32.totalorder %s1158_s3, %s1159_s27  ;;  %p1164_p7 = scmp.lt.s32.totalorder %s1158_s3, %s1876_s2 }
  0x33   : > { %v318_v44 = vsel %vm307_vm0, %v285_v41, 0.0  ;;  %v322_v51 = vsel %vm307_vm0, %v289_v45, 0.0  ;;  %v323_v52 = vsel %vm307_vm0, %v290_v46, 0.0  ;;  %vm708_vm1 = vcmask 31744   ;;  %p1165_p8 = scmp.lt.s32.totalorder %s1163_s25, %s1159_s27 }
  0x34   : > { %v321_v53 = vsel %vm307_vm0, %v288_v49, 0.0  ;;  %vm742_vm2 = vcmask 97280   ;;  %vm725_vm3 = vcmask 64512   ;;  %vm808_vm4 = vcmask 123904   ;;  %p1161_p5 = pnand %p1160_p4, %p1305_p9 }
  0x35   : > { %p1166_p10 = por %p1165_p8, %p1164_p7 }
  0x36   : > { %p1162_p6 = pneg %p1161_p5 }
  0x37   : > { %340 = vrot.lane.b32.xlu2 %v1385_v6, %s1233_s6  ;;  %338 = vrot.lane.b32.xlu1 %v1388_v7, %s1233_s6 }
  0x38   : > { %336 = vrot.lane.b32.xlu0 %v1391_v8, %s1233_s6  ;;  %p1167_p13 = pnand %p1166_p10, %p1162_p6 }
  0x3f   : > { %346 = vrot.lane.b32.xlu2 %v1400_v9, %s1233_s6  ;;  %344 = vrot.lane.b32.xlu1 %v1403_v10, %s1233_s6 }
  0x40   : > { %342 = vrot.lane.b32.xlu0 %v1406_v11, %s1233_s6 }
  0x47   : > { %352 = vrot.lane.b32.xlu2 %v1415_v12, %s1233_s6  ;;  %350 = vrot.lane.b32.xlu1 %v1418_v13, %s1233_s6 }
  0x48   : > { %348 = vrot.lane.b32.xlu0 %v1421_v14, %s1233_s6 }
  0x4f   : > { %390 = vrot.lane.b32.xlu2 %v1376_v5, %s1234_s21  ;;  %388 = vrot.lane.b32.xlu1 %v1361_v2, %s1234_s21 }
  0x50   : > { %354 = vrot.lane.b32.xlu0 %v1430_v15, %s1233_s6 }
  0x57   : > { %396 = vrot.lane.b32.xlu2 %v1355_v0, %s1234_s21  ;;  %394 = vrot.lane.b32.xlu1 %v1373_v4, %s1234_s21 }
  0x58   : > { %392 = vrot.lane.b32.xlu0 %v1358_v1, %s1234_s21 }
  0x5f   : > { %402 = vrot.lane.b32.xlu2 %v1388_v7, %s1234_s21  ;;  %400 = vrot.lane.b32.xlu1 %v1391_v8, %s1234_s21 }
  0x60   : > { %398 = vrot.lane.b32.xlu0 %v1370_v3, %s1234_s21 }
  0x67   : > { %408 = vrot.lane.b32.xlu2 %v1403_v10, %s1234_s21  ;;  %406 = vrot.lane.b32.xlu1 %v1406_v11, %s1234_s21 }
  0x68   : > { %404 = vrot.lane.b32.xlu0 %v1385_v6, %s1234_s21 }
  0x6f   : > { %414 = vrot.lane.b32.xlu2 %v1418_v13, %s1234_s21  ;;  %412 = vrot.lane.b32.xlu1 %v1421_v14, %s1234_s21 }
  0x70   : > { %410 = vrot.lane.b32.xlu0 %v1400_v9, %s1234_s21 }
  0x77   : > { %418 = vrot.lane.b32.xlu1 %v1430_v15, %s1234_s21  ;;  %468 = vrot.lane.b32.xlu2 %v308_v17, %s1235_s8 }
  0x78   : > { %416 = vrot.lane.b32.xlu0 %v1415_v12, %s1234_s21 }
  0x7f   : > { %472 = vrot.lane.b32.xlu1 %v310_v21, %s1235_s8  ;;  %474 = vrot.lane.b32.xlu2 %v311_v22, %s1235_s8 }
  0x80   : > { %470 = vrot.lane.b32.xlu0 %v309_v23, %s1235_s8 }
  0x81   : > { %v333_v26 = vpop.permute.xlu2 %332 }
  0x82   : > { %v1531_v62 = vmax.f32 %v1355_v0, %v333_v26 }
  0x87   : > { %478 = vrot.lane.b32.xlu1 %v313_v28, %s1235_s8  ;;  %480 = vrot.lane.b32.xlu2 %v314_v29, %s1235_s8 }
  0x88   : > { %476 = vrot.lane.b32.xlu0 %v312_v30, %s1235_s8 }
  0x89   : > { %v1489_v33 = vpop.permute.xlu2 %334 }
  0x8f   : > { %484 = vrot.lane.b32.xlu1 %v316_v35, %s1235_s8  ;;  %486 = vrot.lane.b32.xlu2 %v317_v36, %s1235_s8 }
  0x90   : > { %482 = vrot.lane.b32.xlu0 %v315_v37, %s1235_s8 }
  0x91   : > { %v1500_v40 = vpop.permute.xlu2 %340 }
  0x97   : > { %490 = vrot.lane.b32.xlu1 %v319_v42, %s1235_s8  ;;  %492 = vrot.lane.b32.xlu2 %v320_v43, %s1235_s8 }
  0x98   : > { %488 = vrot.lane.b32.xlu0 %v318_v44, %s1235_s8 }
  0x99   : > { %v1511_v47 = vpop.permute.xlu2 %346  ;;  %v329_v48 = vpop.permute.xlu1 %328 }
  0x9a   : > { %v325_v50 = vpop.permute.xlu0 %324  ;;  %v374_v28 = vmax.f32 %v1358_v1, %v329_v48 }
  0x9b   : > { %v1547_v0 = vmax.f32 %v1361_v2, %v325_v50 }
  0x9f   : > { %496 = vrot.lane.b32.xlu1 %v322_v51, %s1235_s8  ;;  %498 = vrot.lane.b32.xlu2 %v323_v52, %s1235_s8 }
  0xa0   : > { %494 = vrot.lane.b32.xlu0 %v321_v53, %s1235_s8 }
  0xa1   : > { %v1520_v54 = vpop.permute.xlu2 %352  ;;  %v331_v55 = vpop.permute.xlu1 %330 }
  0xa2   : > { %v327_v56 = vpop.permute.xlu0 %326  ;;  %v1563_v2 = vmax.f32 %v1373_v4, %v331_v55  ;;  %v377_v4 = vmax.f32 %v1370_v3, %v1489_v33  ;;  %v380_v3 = vmax.f32 %v1385_v6, %v1500_v40  ;;  %v383_v6 = vmax.f32 %v1400_v9, %v1511_v47 }
  0xa3   : > { %v1523_v57 = vmax.f32 %v1376_v5, %v327_v56  ;;  %v386_v9 = vmax.f32 %v1415_v12, %v1520_v54 }
  0xa9   : > { %v339_v58 = vpop.permute.xlu1 %338  ;;  %v391_v59 = vpop.permute.xlu2 %390 }
  0xaa   : > { %v1526_v60 = vmax.f32 %v1523_v57, %v391_v59  ;;  %v337_v61 = vpop.permute.xlu0 %336  ;;  %v1539_v5 = vmax.f32 %v1388_v7, %v339_v58 }
  0xab   : > { %v1584_v1 = vmax.f32 %v1391_v8, %v337_v61 }
  0xac   : > { %550 = vrot.lane.b32.xlu1 %v1526_v60, %s1233_s6 }
  0xb1   : > { %v345_v63 = vpop.permute.xlu1 %344  ;;  %v397_v16 = vpop.permute.xlu2 %396 }
  0xb2   : > { %v1534_v17 = vmax.f32 %v1531_v62, %v397_v16  ;;  %v343_v18 = vpop.permute.xlu0 %342  ;;  %v1550_v23 = vmax.f32 %v1403_v10, %v345_v63 }
  0xb3   : > { %v1600_v8 = vmax.f32 %v1406_v11, %v343_v18 }
  0xb4   : > { %556 = vrot.lane.b32.xlu1 %v1534_v17, %s1233_s6 }
  0xb9   : > { %v351_v19 = vpop.permute.xlu1 %350  ;;  %v403_v20 = vpop.permute.xlu2 %402 }
  0xba   : > { %v1542_v21 = vmax.f32 %v1539_v5, %v403_v20  ;;  %v349_v22 = vpop.permute.xlu0 %348  ;;  %v1566_v10 = vmax.f32 %v1418_v13, %v351_v19 }
  0xbb   : > { %v1616_v11 = vmax.f32 %v1421_v14, %v349_v22 }
  0xbc   : > { %562 = vrot.lane.b32.xlu1 %v1542_v21, %s1233_s6 }
  0xc1   : > { %v409_v24 = vpop.permute.xlu2 %408  ;;  %v389_v25 = vpop.permute.xlu1 %388 }
  0xc2   : > { %v1553_v7 = vmax.f32 %v1550_v23, %v409_v24  ;;  %v1556_v26 = vmax.f32 %v1547_v0, %v389_v25  ;;  %v355_v27 = vpop.permute.xlu0 %354 }
  0xc3   : > { %v1632_v14 = vmax.f32 %v1430_v15, %v355_v27 }
  0xc4   : > { %548 = vrot.lane.b32.xlu0 %v1556_v26, %s1233_s6  ;;  %568 = vrot.lane.b32.xlu1 %v1553_v7, %s1233_s6 }
  0xc9   : > { %v415_v29 = vpop.permute.xlu2 %414  ;;  %v395_v30 = vpop.permute.xlu1 %394 }
  0xca   : > { %v1570_v31 = vmax.f32 %v1566_v10, %v415_v29  ;;  %v1573_v32 = vmax.f32 %v1563_v2, %v395_v30  ;;  %v393_v34 = vpop.permute.xlu0 %392 }
  0xcb   : > { %v1575_v35 = vmax.f32 %v374_v28, %v393_v34 }
  0xcc   : > { %554 = vrot.lane.b32.xlu0 %v1573_v32, %s1233_s6  ;;  %574 = vrot.lane.b32.xlu1 %v1570_v31, %s1233_s6 }
  0xcd   : > { %552 = vrot.lane.b32.xlu2 %v1575_v35, %s1233_s6 }
  0xd1   : > { %v401_v13 = vpop.permute.xlu1 %400  ;;  %v469_v50 = vpop.permute.xlu2 %468 }
  0xd2   : > { %v1589_v36 = vmax.f32 %v1584_v1, %v401_v13  ;;  %v399_v37 = vpop.permute.xlu0 %398  ;;  %v516_v24 = vmax.f32 %v1547_v0, %v469_v50 }
  0xd3   : > { %v1591_v38 = vmax.f32 %v377_v4, %v399_v37 }
  0xd4   : > { %596 = vrot.lane.b32.xlu1 %v1556_v26, %s1234_s21  ;;  %560 = vrot.lane.b32.xlu0 %v1589_v36, %s1233_s6 }
  0xd5   : > { %558 = vrot.lane.b32.xlu2 %v1591_v38, %s1233_s6 }
  0xd9   : > { %v407_v33 = vpop.permute.xlu1 %406  ;;  %v475_v12 = vpop.permute.xlu2 %474 }
  0xda   : > { %v1605_v39 = vmax.f32 %v1600_v8, %v407_v33  ;;  %v405_v41 = vpop.permute.xlu0 %404  ;;  %v519_v30 = vmax.f32 %v1563_v2, %v475_v12 }
  0xdb   : > { %v1607_v42 = vmax.f32 %v380_v3, %v405_v41 }
  0xdc   : > { %602 = vrot.lane.b32.xlu1 %v1573_v32, %s1234_s21  ;;  %566 = vrot.lane.b32.xlu0 %v1605_v39, %s1233_s6 }
  0xdd   : > { %564 = vrot.lane.b32.xlu2 %v1607_v42, %s1233_s6 }
  0xe1   : > { %v413_v40 = vpop.permute.xlu1 %412  ;;  %v481_v52 = vpop.permute.xlu2 %480 }
  0xe2   : > { %v1621_v43 = vmax.f32 %v1616_v11, %v413_v40  ;;  %v411_v44 = vpop.permute.xlu0 %410  ;;  %v522_v13 = vmax.f32 %v1584_v1, %v481_v52 }
  0xe3   : > { %v1623_v45 = vmax.f32 %v383_v6, %v411_v44 }
  0xe4   : > { %608 = vrot.lane.b32.xlu1 %v1589_v36, %s1234_s21  ;;  %572 = vrot.lane.b32.xlu0 %v1621_v43, %s1233_s6 }
  0xe5   : > { %570 = vrot.lane.b32.xlu2 %v1623_v45, %s1233_s6 }
  0xe9   : > { %v419_v46 = vpop.permute.xlu1 %418  ;;  %v487_v58 = vpop.permute.xlu2 %486 }
  0xea   : > { %v1637_v47 = vmax.f32 %v1632_v14, %v419_v46  ;;  %v417_v48 = vpop.permute.xlu0 %416  ;;  %v525_v33 = vmax.f32 %v1600_v8, %v487_v58 }
  0xeb   : > { %v1639_v49 = vmax.f32 %v386_v9, %v417_v48 }
  0xec   : > { %614 = vrot.lane.b32.xlu1 %v1605_v39, %s1234_s21  ;;  %578 = vrot.lane.b32.xlu0 %v1637_v47, %s1233_s6 }
  0xed   : > { %576 = vrot.lane.b32.xlu2 %v1639_v49, %s1233_s6 }
  0xf1   : > { %v473_v15 = vpop.permute.xlu1 %472  ;;  %v493_v16 = vpop.permute.xlu2 %492 }
  0xf2   : > { %v518_v53 = vmax.f32 %v374_v28, %v473_v15  ;;  %v471_v55 = vpop.permute.xlu0 %470  ;;  %v528_v40 = vmax.f32 %v1616_v11, %v493_v16 }
  0xf3   : > { %v517_v19 = vmax.f32 %v1523_v57, %v471_v55 }
  0xf4   : > { %620 = vrot.lane.b32.xlu1 %v1621_v43, %s1234_s21  ;;  %600 = vrot.lane.b32.xlu0 %v1575_v35, %s1234_s21 }
  0xf5   : > { %598 = vrot.lane.b32.xlu2 %v1526_v60, %s1234_s21 }
  0xf9   : > { %v479_v51 = vpop.permute.xlu1 %478  ;;  %v499_v27 = vpop.permute.xlu2 %498 }
  0xfa   : > { %v521_v56 = vmax.f32 %v377_v4, %v479_v51  ;;  %v477_v61 = vpop.permute.xlu0 %476 }
  0xfb   : > { %v520_v28 = vmax.f32 %v1531_v62, %v477_v61 }
  0xfc   : > { %626 = vrot.lane.b32.xlu1 %v1637_v47, %s1234_s21  ;;  %606 = vrot.lane.b32.xlu0 %v1591_v38, %s1234_s21 }
  0xfd   : > { %604 = vrot.lane.b32.xlu2 %v1534_v17, %s1234_s21 }
 0x101   : > { %v485_v54 = vpop.permute.xlu1 %484 }
 0x102   : > { %v524_v63 = vmax.f32 %v380_v3, %v485_v54  ;;  %v483_v20 = vpop.permute.xlu0 %482 }
 0x103   : > { %v523_v4 = vmax.f32 %v1539_v5, %v483_v20 }
 0x104   : > { %664 = vrot.lane.b32.xlu1 %v518_v53, %s1236_s15  ;;  %612 = vrot.lane.b32.xlu0 %v1607_v42, %s1234_s21 }
 0x105   : > { %610 = vrot.lane.b32.xlu2 %v1542_v21, %s1234_s21 }
 0x109   : > { %v491_v59 = vpop.permute.xlu1 %490 }
 0x10a   : > { %v527_v22 = vmax.f32 %v383_v6, %v491_v59  ;;  %v489_v34 = vpop.permute.xlu0 %488 }
 0x10b   : > { %v526_v3 = vmax.f32 %v1550_v23, %v489_v34 }
 0x10c   : > { %670 = vrot.lane.b32.xlu1 %v521_v56, %s1236_s15  ;;  %618 = vrot.lane.b32.xlu0 %v1623_v45, %s1234_s21 }
 0x10d   : > { %616 = vrot.lane.b32.xlu2 %v1553_v7, %s1234_s21 }
 0x111   : > { %v497_v18 = vpop.permute.xlu1 %496 }
 0x112   : > { %v530_v29 = vmax.f32 %v386_v9, %v497_v18  ;;  %v495_v62 = vpop.permute.xlu0 %494  ;;  %v531_v9 = vmax.f32 %v1632_v14, %v499_v27 }
 0x113   : > { %v529_v6 = vmax.f32 %v1566_v10, %v495_v62 }
 0x114   : > { %676 = vrot.lane.b32.xlu1 %v524_v63, %s1236_s15  ;;  %624 = vrot.lane.b32.xlu0 %v1639_v49, %s1234_s21 }
 0x115   : > { %622 = vrot.lane.b32.xlu2 %v1570_v31, %s1234_s21 }
 0x11c   : > { %682 = vrot.lane.b32.xlu1 %v527_v22, %s1236_s15  ;;  %662 = vrot.lane.b32.xlu0 %v517_v19, %s1236_s15 }
 0x11d   : > { %660 = vrot.lane.b32.xlu2 %v516_v24, %s1236_s15 }
 0x11e   : > { %v1679_v25 = vpop.permute.xlu1 %550 }
 0x124   : > { %688 = vrot.lane.b32.xlu1 %v530_v29, %s1236_s15  ;;  %668 = vrot.lane.b32.xlu0 %v520_v28, %s1236_s15 }
 0x125   : > { %666 = vrot.lane.b32.xlu2 %v519_v30, %s1236_s15 }
 0x126   : > { %v1686_v57 = vpop.permute.xlu1 %556 }
 0x127   : > { %v553_v0 = vpop.permute.xlu2 %552 }
 0x128   : > { %v711_v20 = vsel %vm708_vm1, %v1575_v35, %v553_v0 }
 0x12c   : > { %674 = vrot.lane.b32.xlu0 %v523_v4, %s1236_s15 }
 0x12d   : > { %672 = vrot.lane.b32.xlu2 %v522_v13, %s1236_s15 }
 0x12e   : > { %v1692_v2 = vpop.permute.xlu1 %562 }
 0x12f   : > { %v1694_v37 = vpop.permute.xlu2 %558 }
 0x134   : > { %680 = vrot.lane.b32.xlu0 %v526_v3, %s1236_s15 }
 0x135   : > { %678 = vrot.lane.b32.xlu2 %v525_v33, %s1236_s15 }
 0x136   : > { %v1700_v5 = vpop.permute.xlu1 %568  ;;  %v549_v1 = vpop.permute.xlu0 %548 }
 0x137   : > { %v565_v41 = vpop.permute.xlu2 %564  ;;  %v709_v3 = vsel %vm708_vm1, %v1556_v26, %v549_v1 }
 0x138   : > { %v717_v33 = vsel %vm708_vm1, %v1607_v42, %v565_v41 }
 0x13c   : > { %686 = vrot.lane.b32.xlu0 %v529_v6, %s1236_s15 }
 0x13d   : > { %684 = vrot.lane.b32.xlu2 %v528_v40, %s1236_s15 }
 0x13e   : > { %v1706_v44 = vpop.permute.xlu1 %574  ;;  %v555_v23 = vpop.permute.xlu0 %554 }
 0x13f   : > { %v1708_v8 = vpop.permute.xlu2 %570  ;;  %v712_v22 = vsel %vm708_vm1, %v1573_v32, %v555_v23  ;;  %v710_v32 = vsel %vm708_vm1, %v1526_v60, %v1679_v25 }
 0x145   : > { %690 = vrot.lane.b32.xlu2 %v531_v9, %s1236_s15 }
 0x146   : > { %v597_v46 = vpop.permute.xlu1 %596  ;;  %v1712_v48 = vpop.permute.xlu0 %560 }
 0x147   : > { %v1714_v50 = vpop.permute.xlu2 %576  ;;  %v726_v6 = vsel %vm725_vm3, %v709_v3, %v597_v46 }
 0x14e   : > { %v603_v10 = vpop.permute.xlu1 %602  ;;  %v567_v11 = vpop.permute.xlu0 %566 }
 0x14f   : > { %v599_v15 = vpop.permute.xlu2 %598  ;;  %v729_v27 = vsel %vm725_vm3, %v712_v22, %v603_v10  ;;  %v718_v40 = vsel %vm708_vm1, %v1605_v39, %v567_v11 }
 0x150   : > { %v727_v23 = vsel %vm725_vm3, %v710_v32, %v599_v15  ;;  %v713_v15 = vsel %vm708_vm1, %v1534_v17, %v1686_v57 }
 0x156   : > { %v1716_v12 = vpop.permute.xlu1 %608  ;;  %v1718_v51 = vpop.permute.xlu0 %572 }
 0x157   : > { %v605_v52 = vpop.permute.xlu2 %604  ;;  %v721_v3 = vsel %vm708_vm1, %v1621_v43, %v1718_v51  ;;  %v722_v43 = vsel %vm708_vm1, %v1570_v31, %v1706_v44 }
 0x15e   : > { %v615_v53 = vpop.permute.xlu1 %614  ;;  %v1720_v54 = vpop.permute.xlu0 %578 }
 0x15f   : > { %v1722_v55 = vpop.permute.xlu2 %610  ;;  %v735_v10 = vsel %vm725_vm3, %v718_v40, %v615_v53  ;;  %v714_v53 = vsel %vm708_vm1, %v1591_v38, %v1694_v37 }
 0x166   : > { %v1724_v14 = vpop.permute.xlu1 %620  ;;  %v601_v56 = vpop.permute.xlu0 %600 }
 0x167   : > { %v1726_v58 = vpop.permute.xlu2 %616  ;;  %v728_v28 = vsel %vm725_vm3, %v711_v20, %v601_v56  ;;  %v715_v20 = vsel %vm708_vm1, %v1589_v36, %v1712_v48  ;;  %v716_v36 = vsel %vm708_vm1, %v1542_v21, %v1692_v2 }
 0x168   : > { %v732_v17 = vsel %vm725_vm3, %v715_v20, %v1716_v12  ;;  %v724_v12 = vsel %vm708_vm1, %v1637_v47, %v1720_v54 }
 0x16e   : > { %v1728_v59 = vpop.permute.xlu1 %626  ;;  %v607_v61 = vpop.permute.xlu0 %606 }
 0x16f   : > { %v1730_v63 = vpop.permute.xlu2 %622 }
 0x170   : > { %v739_v51 = vsel %vm725_vm3, %v722_v43, %v1730_v63 }
 0x176   : > { %v665_v16 = vpop.permute.xlu1 %664  ;;  %v613_v18 = vpop.permute.xlu0 %612 }
 0x177   : > { %v661_v19 = vpop.permute.xlu2 %660  ;;  %v745_v34 = vsel %vm742_vm2, %v728_v28, %v665_v16  ;;  %v734_v56 = vsel %vm725_vm3, %v717_v33, %v613_v18  ;;  %v730_v16 = vsel %vm725_vm3, %v713_v15, %v605_v52  ;;  %v731_v18 = vsel %vm725_vm3, %v714_v53, %v607_v61 }
 0x178   : > { %v743_v60 = vsel %vm742_vm2, %v726_v6, %v661_v19  ;;  %v723_v52 = vsel %vm708_vm1, %v1639_v49, %v1714_v50  ;;  %v733_v61 = vsel %vm725_vm3, %v716_v36, %v1722_v55  ;;  %v719_v55 = vsel %vm708_vm1, %v1553_v7, %v1700_v5 }
 0x17e   : > { %v1736_v24 = vpop.permute.xlu0 %618  ;;  %v671_v29 = vpop.permute.xlu1 %670 }
 0x17f   : > { %v667_v30 = vpop.permute.xlu2 %666  ;;  %v748_v22 = vsel %vm742_vm2, %v731_v18, %v671_v29 }
 0x180   : > { %v746_v4 = vsel %vm742_vm2, %v729_v27, %v667_v30 }
 0x181   : > { %v792_v13 = vmax.f32 %v745_v34, %v746_v4 }
 0x186   : > { %v625_v62 = vpop.permute.xlu0 %624  ;;  %v677_v0 = vpop.permute.xlu1 %676 }
 0x187   : > { %v673_v35 = vpop.permute.xlu2 %672  ;;  %v751_v42 = vsel %vm742_vm2, %v734_v56, %v677_v0  ;;  %v740_v21 = vsel %vm725_vm3, %v723_v52, %v625_v62  ;;  %v736_v62 = vsel %vm725_vm3, %v719_v55, %v1726_v58 }
 0x188   : > { %v749_v38 = vsel %vm742_vm2, %v732_v17, %v673_v35 }
 0x18e   : > { %v663_v9 = vpop.permute.xlu0 %662  ;;  %v683_v11 = vpop.permute.xlu1 %682 }
 0x18f   : > { %v744_v26 = vsel %vm742_vm2, %v727_v23, %v663_v9  ;;  %v679_v25 = vpop.permute.xlu2 %678 }
 0x190   : > { %v791_v1 = vmax.f32 %v743_v60, %v744_v26  ;;  %v752_v41 = vsel %vm742_vm2, %v735_v10, %v679_v25 }
 0x191   : > { %v795_v39 = vmax.f32 %v751_v42, %v752_v41 }
 0x192   : > { %v839_v46 = vmax.f32 %v791_v1, %v745_v34  ;;  %v741_v34 = vsel %vm725_vm3, %v724_v12, %v1728_v59  ;;  %v720_v59 = vsel %vm708_vm1, %v1623_v45, %v1708_v8  ;;  %v738_v45 = vsel %vm725_vm3, %v721_v3, %v1724_v14 }
 0x193   : > { %v737_v0 = vsel %vm725_vm3, %v720_v59, %v1736_v24 }
 0x194   : > { %846 = vst.msk [vmem:[%s1760_s18] sm:$0x3] %vm808_vm4, %v839_v46  ;;  %v754_v7 = vsel %vm742_vm2, %v737_v0, %v683_v11 }
 0x196   : > { %v669_v19 = vpop.permute.xlu0 %668  ;;  %v689_v48 = vpop.permute.xlu1 %688 }
 0x197   : > { %v747_v27 = vsel %vm742_vm2, %v730_v16, %v669_v19  ;;  %v685_v28 = vpop.permute.xlu2 %684 }
 0x198   : > { %v793_v57 = vmax.f32 %v747_v27, %v748_v22  ;;  %v840_v30 = vmax.f32 %v792_v13, %v747_v27  ;;  %v757_v13 = vsel %vm742_vm2, %v740_v21, %v689_v48  ;;  %v755_v58 = vsel %vm742_vm2, %v738_v45, %v685_v28 }
 0x19a   : > { %v841_v37 = vmax.f32 %v793_v57, %v749_v38  ;;  %847 = vst.msk [vmem:[%s1760_s18 + $0x2] sm:$0x3] %vm808_vm4, %v840_v30 }
 0x19c   : > { %848 = vst.msk [vmem:[%s1760_s18 + $0x4] sm:$0x3] %vm808_vm4, %v841_v37 }
 0x19e   : > { %v675_v29 = vpop.permute.xlu0 %674 }
 0x19f   : > { %v750_v2 = vsel %vm742_vm2, %v733_v61, %v675_v29  ;;  %v691_v4 = vpop.permute.xlu2 %690 }
 0x1a0   : > { %v794_v49 = vmax.f32 %v749_v38, %v750_v2  ;;  %v758_v50 = vsel %vm742_vm2, %v741_v34, %v691_v4 }
 0x1a1   : > { %v798_v35 = vmax.f32 %v757_v13, %v758_v50 }
 0x1a2   : > { %v842_v47 = vmax.f32 %v794_v49, %v751_v42 }
 0x1a3   : > { %v806_v54 = vmax.f32 %v798_v35, 0.0 }
 0x1a4   : > { %849 = vst.msk [vmem:[%s1760_s18 + $0x6] sm:$0x3] %vm808_vm4, %v842_v47 }
 0x1a5   : > { %997 = vst.msk [vmem:[%s1760_s18 + $0xe] sm:$0x3] %vm808_vm4, %v806_v54 }
 0x1a6   : > { %v681_v32 = vpop.permute.xlu0 %680 }
 0x1a7   : > { %v753_v5 = vsel %vm742_vm2, %v736_v62, %v681_v32 }
 0x1a8   : > { %v796_v8 = vmax.f32 %v753_v5, %v754_v7  ;;  %v843_v33 = vmax.f32 %v795_v39, %v753_v5 }
 0x1aa   : > { %v844_v24 = vmax.f32 %v796_v8, %v755_v58  ;;  %850 = vst.msk [vmem:[%s1760_s18 + $0x8] sm:$0x3] %vm808_vm4, %v843_v33 }
 0x1ac   : > { %851 = vst.msk [vmem:[%s1760_s18 + $0xa] sm:$0x3] %vm808_vm4, %v844_v24 }
 0x1ae   : > { %v687_v14 = vpop.permute.xlu0 %686 }
 0x1af   : > { %v756_v6 = vsel %vm742_vm2, %v739_v51, %v687_v14 }
 0x1b0   : > { %v797_v40 = vmax.f32 %v755_v58, %v756_v6 }
 0x1b2   : > { %v845_v23 = vmax.f32 %v797_v40, %v757_v13 }
 0x1b4   : > { %852 = vst.msk [vmem:[%s1760_s18 + $0xc] sm:$0x3] %vm808_vm4, %v845_v23 }
 0x1b5   : > { %1170 = shalt.err (!%p1167_p13)
}
 0x1b6   : > { %s1237_s4 = smov 32   ;;  %s1238_s8 = smov 2  }
 0x1b7   : > { %1012 = dma.vmem_to_hbm [thread:$0]  (%p1305_p9), %s869_s12, 256, %s871_s29, %s854_s30, %s1237_s4, %s1237_s4, %s1238_s8  }
 0x1b8 PF: > { %s885_s15 = sand.u32 1, %s1209_s9   ;;  %p1022_p0 = pnand %p986_p12, %p1312_p11 }
 0x1b9   : > { %s886_s16 = scalar_lea.sflag [#allocation4], %s885_s15 }
 0x1ba   : > { %p1023_p1 = pneg %p1022_p0 }
 0x1bc   : > { %1204 = dma.done.wait (%p1023_p1), %s886_s16, 256  }
 0x1bd   : > { %1206 = vsyncadd (%p1023_p1), %s886_s16, 4294967040  ;;  %s21_s14 = sadd.s32 1, %s1229_s14   ;;  %s1882_s9 = smov %s1213_s10 }
 0x1be   : > { %p18_p2 = scmp.ge.s32.totalorder %s21_s14, 4   ;;  %s1883_s10 = smov %s1217_s11 }
 0x1bf   : > { %s1884_s11 = smov %s1310_s23  ;;  %s1885_s12 = smov %s1225_s13 }
 0x1c0   : > { %s1886_s13 = smov %s1888_s17  ;;  %20 = sbr.rel (!%p18_p2) target bundleno = 8 (0x8), region = 87 }
 0x1c5   :  { %892 = vsyncpa [#allocation3], 1 }
 0x1c6   :  { %894 = vsyncpa [#allocation3 + $0x1], 1 }
 0x1c7   :  { %895 = vsyncpa [#allocation6], 1 }
 0x1c8   :  { %897 = vsyncpa [#allocation6 + $0x1], 1 }
 0x1c9   :  { %898 = vsyncpa [#allocation4], 1 }
 0x1ca   :  { %900 = vsyncpa [#allocation4 + $0x1], 1 }

</bundles_post_ra>
